<compile_context>
chip_gen: v7x
topology: tpu7x:2x2x1
jax: 0.10.0
libtpu: 0.0.40
codegen_flags: <defaults>
</compile_context>

<pallas_src>
import jax
import jax.numpy as jnp
from jax.experimental import pallas as pl
from jax.experimental.pallas import tpu as pltpu

NEG_INF = -1e30
LANE = 128


# ----------------------------------------------------------------------------
# Fused Pallas kernel: grid = (phase, row_tile)
#   phase 0: HW2[row strip] = relu(A_strip @ XW1_pad + b1_pad) @ W2_pad   (VMEM scratch)
#   phase 1: OUT[row strip] = log_softmax(A_strip @ HW2 + b2_pad)
# ----------------------------------------------------------------------------
def gcn_fused_kernel(a_ref, xw1_ref, b1_ref, w2_ref, b2_ref, out_ref, hw2_ref):
    phase = pl.program_id(0)
    i = pl.program_id(1)
    tm = a_ref.shape[0]
    row = pl.multiple_of(i * tm, tm)

    @pl.when(phase == 0)
    def _():
        # layer 1:  h = relu(A_strip @ XW1_pad + b1_pad)
        h = jnp.dot(a_ref[...], xw1_ref[...], preferred_element_type=jnp.float32)
        h = jnp.maximum(h + b1_ref[...], 0.0)
        # TODO(synk): dropout(training=True) not modeled; matches eval mode (identity).
        hw2_ref[pl.ds(row, tm), :] = jnp.dot(
            h.astype(w2_ref.dtype), w2_ref[...],
            preferred_element_type=jnp.float32,
        ).astype(hw2_ref.dtype)
        # Keep the output block deterministic in phase 0 (rewritten in phase 1).
        out_ref[...] = jnp.zeros_like(out_ref)

    @pl.when(phase == 1)
    def _():
        # layer 2 aggregation + numerically-stable log_softmax.
        # Padded classes: W2_pad cols are exactly zero and b2_pad = -1e30,
        # so exp() underflows to 0 and they drop out of the row softmax.
        z = jnp.dot(a_ref[...], hw2_ref[...], preferred_element_type=jnp.float32)
        z = z + b2_ref[...]
        m = jnp.max(z, axis=1, keepdims=True)
        s = z - m
        lse = jnp.log(jnp.sum(jnp.exp(s), axis=1, keepdims=True))
        out_ref[...] = s - lse


# ----------------------------------------------------------------------------
# Wrapper
# ----------------------------------------------------------------------------
def gcn_forward(a_pad, x, w1, b1, w2, b2, *, num_nodes, tm=128):
    """a_pad: (n_pad, n_pad) bf16 normalized adjacency; rows/cols >= num_nodes are zero."""
    n = num_nodes
    n_pad = a_pad.shape[0]
    assert n_pad % tm == 0, "n_pad must be a multiple of tm"
    f = x.shape[1]
    h = w1.shape[1]
    c = w2.shape[1]
    h_pad = pl.cdiv(h, LANE) * LANE   # 16 -> 128 : lane-dense intermediates
    c_pad = pl.cdiv(c, LANE) * LANE   #  8 -> 128 : lane-dense final store
    n_tiles = n_pad // tm

    # ---- pad + cast small operands (bf16 MXU operands, f32 biases) ----------
    x_p = jnp.zeros((n_pad, f), jnp.bfloat16).at[:n, :].set(x.astype(jnp.bfloat16))
    w1_p = jnp.zeros((f, h_pad), jnp.bfloat16).at[:, :h].set(w1.astype(jnp.bfloat16))
    b1_p = jnp.zeros((1, h_pad), jnp.float32).at[0, :h].set(
        b1.reshape(-1).astype(jnp.float32))
    w2_p = jnp.zeros((h_pad, c_pad), jnp.bfloat16).at[:h, :c].set(
        w2.astype(jnp.bfloat16))
    b2_p = jnp.full((1, c_pad), NEG_INF, jnp.float32).at[0, :c].set(
        b2.reshape(-1).astype(jnp.float32))

    # ---- layer-1 feature transform folded into XLA (tiny N x F x 16 GEMM) ---
    xw1 = jnp.dot(x_p, w1_p, preferred_element_type=jnp.float32).astype(jnp.bfloat16)

    # ---- fused aggregation kernel -------------------------------------------
    # NOTE(perf): at realistic N raise tm (256-512) and, if needed,
    # vmem_limit_bytes via pltpu.CompilerParams; everything here is tiny.
    logp = pl.pallas_call(
        gcn_fused_kernel,
        out_shape=jax.ShapeDtypeStruct((n_pad, c_pad), jnp.float32),
        grid=(2, n_tiles),
        in_specs=[
            pl.BlockSpec((tm, n_pad), lambda p, i: (i, 0)),      # A row strip (streamed)
            pl.BlockSpec((n_pad, h_pad), lambda p, i: (0, 0)),   # resident XW1 (padded)
            pl.BlockSpec((1, h_pad), lambda p, i: (0, 0)),       # resident b1 (padded)
            pl.BlockSpec((h_pad, c_pad), lambda p, i: (0, 0)),   # resident W2 (padded)
            pl.BlockSpec((1, c_pad), lambda p, i: (0, 0)),       # resident b2 (padded)
        ],
        out_specs=pl.BlockSpec((tm, c_pad), lambda p, i: (i, 0)),
        scratch_shapes=[pltpu.VMEM((n_pad, c_pad), jnp.bfloat16)],  # HW2 stays on-chip
        compiler_params=pltpu.CompilerParams(
            dimension_semantics=("arbitrary", "arbitrary")),
    )(a_pad, xw1, b1_p, w2_p, b2_p)

    return logp[:n, :c]


# ----------------------------------------------------------------------------
# Plain-JAX glue: normalized dense adjacency (PyG gcn_norm semantics), built
# directly at padded size and cast to bf16 once (no extra O(N^2) pad/copy).
# ----------------------------------------------------------------------------
def build_normalized_adjacency(edge_index, num_nodes, num_nodes_padded):
    src = edge_index[0]
    dst = edge_index[1]
    a = jnp.zeros((num_nodes_padded, num_nodes_padded), jnp.float32)
    a = a.at[dst, src].add(1.0)
    idx = jnp.arange(num_nodes)
    a = a.at[idx, idx].add(1.0)                                  # self loops (real nodes)
    deg = jnp.sum(a, axis=1)
    deg_inv_sqrt = jnp.where(deg > 0.0, jax.lax.rsqrt(jnp.maximum(deg, 1e-12)), 0.0)
    a = deg_inv_sqrt[:, None] * a * deg_inv_sqrt[None, :]        # D^-1/2 (A+I) D^-1/2
    return a.astype(jnp.bfloat16)


# ----------------------------------------------------------------------------
# Main: deterministic synthetic graph + params
# ----------------------------------------------------------------------------
if __name__ == "__main__":
    N = 256       # nodes  (2 row tiles at TM=128 -> exercises both grid phases)
    F = 64        # input features  (stand-in for data.num_features)
    H = 16        # hidden size (as in the module)
    C = 8         # classes         (stand-in for data.num_classes)
    E = 1024      # directed edges
    TM = 128

    key = jax.random.PRNGKey(0)
    k_x, k_src, k_dst, k_w1, k_w2 = jax.random.split(key, 5)

    # node features (row-normalized, mimicking NormalizeFeatures)
    x = jax.random.uniform(k_x, (N, F), jnp.float32)
    x = x / jnp.clip(jnp.sum(x, axis=1, keepdims=True), 1e-12)

    # random edge_index (2, E)
    src = jax.random.randint(k_src, (E,), 0, N)
    dst = jax.random.randint(k_dst, (E,), 0, N)
    edge_index = jnp.stack([src, dst], axis=0)

    n_pad = pl.cdiv(N, TM) * TM
    a_pad = build_normalized_adjacency(edge_index, N, n_pad)

    # GCNConv params: glorot-style weights, zero bias (deterministic)
    def glorot(k, shape):
        fan_in, fan_out = shape
        limit = jnp.sqrt(6.0 / (fan_in + fan_out))
        return jax.random.uniform(k, shape, jnp.float32, -limit, limit)

    w1 = glorot(k_w1, (F, H))
    b1 = jnp.zeros((H,), jnp.float32)
    w2 = glorot(k_w2, (H, C))
    b2 = jnp.zeros((C,), jnp.float32)

    out = gcn_forward(a_pad, x, w1, b1, w2, b2, num_nodes=N, tm=TM)
    out = jax.block_until_ready(out)

    assert out.shape == (N, C)
    # rows of log_softmax must exponentiate-sum to ~1 and be finite
    assert jnp.allclose(jnp.sum(jnp.exp(out), axis=1), 1.0, atol=1e-4)
    assert bool(jnp.all(jnp.isfinite(out)))

    print("KERNEL_OK")
</pallas_src>

<mosaic_0001>
module attributes {stable_mosaic.version = 11 : i64} {
  func.func @gcn_fused_kernel(%arg0: i32, %arg1: i32, %arg2: memref<128x256xbf16, #tpu.memory_space<vmem>>, %arg3: memref<256x128xbf16, #tpu.memory_space<vmem>>, %arg4: memref<1x128xf32, #tpu.memory_space<vmem>>, %arg5: memref<128x128xbf16, #tpu.memory_space<vmem>>, %arg6: memref<1x128xf32, #tpu.memory_space<vmem>>, %arg7: memref<128x128xf32, #tpu.memory_space<vmem>>, %arg8: memref<256x128xbf16, #tpu.memory_space<vmem>>) attributes {dimension_semantics = [#tpu.dimension_semantics<arbitrary>, #tpu.dimension_semantics<arbitrary>], iteration_bounds = array<i64: 2, 2>, scalar_prefetch = 0 : i64, scratch_operands = 1 : i64, tpu.core_type = #tpu.core_type<tc>, window_params = [{transform_indices = @transform_0, window_bounds = array<i64: 128, 256>}, {pipeline_mode = #tpu.pipeline_mode<synchronous>, transform_indices = @transform_1, window_bounds = array<i64: 256, 128>}, {pipeline_mode = #tpu.pipeline_mode<synchronous>, transform_indices = @transform_2, window_bounds = array<i64: 1, 128>}, {pipeline_mode = #tpu.pipeline_mode<synchronous>, transform_indices = @transform_3, window_bounds = array<i64: 128, 128>}, {pipeline_mode = #tpu.pipeline_mode<synchronous>, transform_indices = @transform_4, window_bounds = array<i64: 1, 128>}, {transform_indices = @transform_5, window_bounds = array<i64: 128, 128>}]} {
    %c128_i32 = arith.constant 128 : i32
    %0 = arith.muli %arg1, %c128_i32 : i32
    %1 = tpu.assume_multiple %0, 128 : i32
    %c0_i32 = arith.constant 0 : i32
    %2 = arith.cmpi eq, %arg0, %c0_i32 : i32
    %3 = arith.extui %2 : i1 to i32
    %c0_i32_0 = arith.constant 0 : i32
    %4 = arith.cmpi ne, %3, %c0_i32_0 : i32
    scf.if %4 {
      %c0 = arith.constant 0 : index
      %c0_2 = arith.constant 0 : index
      %8 = vector.load %arg2[%c0, %c0_2] : memref<128x256xbf16, #tpu.memory_space<vmem>>, vector<128x256xbf16>
      %c0_3 = arith.constant 0 : index
      %c0_4 = arith.constant 0 : index
      %9 = vector.load %arg3[%c0_3, %c0_4] : memref<256x128xbf16, #tpu.memory_space<vmem>>, vector<256x128xbf16>
      %cst = arith.constant dense<0.000000e+00> : vector<128x128xf32>
      %10 = tpu.matmul %8, %9, %cst {dimension_numbers = #tpu.dot_dimension_numbers<[1], [0], [0], [1], [0, 0, 1, 1], [], []>} : vector<128x256xbf16>, vector<256x128xbf16>, vector<128x128xf32> -> vector<128x128xf32>
      %c0_5 = arith.constant 0 : index
      %c0_6 = arith.constant 0 : index
      %11 = vector.load %arg4[%c0_5, %c0_6] : memref<1x128xf32, #tpu.memory_space<vmem>>, vector<1x128xf32>
      %12 = vector.broadcast %11 : vector<1x128xf32> to vector<128x128xf32>
      %13 = arith.addf %10, %12 : vector<128x128xf32>
      %cst_7 = arith.constant 0.000000e+00 : f32
      %14 = vector.broadcast %cst_7 : f32 to vector<128x128xf32>
      %15 = arith.maximumf %13, %14 : vector<128x128xf32>
      %16 = arith.truncf %15 : vector<128x128xf32> to vector<128x128xbf16>
      %c0_8 = arith.constant 0 : index
      %c0_9 = arith.constant 0 : index
      %17 = vector.load %arg5[%c0_8, %c0_9] : memref<128x128xbf16, #tpu.memory_space<vmem>>, vector<128x128xbf16>
      %cst_10 = arith.constant dense<0.000000e+00> : vector<128x128xf32>
      %18 = tpu.matmul %16, %17, %cst_10 {dimension_numbers = #tpu.dot_dimension_numbers<[1], [0], [0], [1], [0, 0, 1, 1], [], []>} : vector<128x128xbf16>, vector<128x128xbf16>, vector<128x128xf32> -> vector<128x128xf32>
      %19 = arith.truncf %18 : vector<128x128xf32> to vector<128x128xbf16>
      %20 = arith.index_cast %1 : i32 to index
      %c0_11 = arith.constant 0 : index
      %21 = vector.load %arg8[%20, %c0_11] : memref<256x128xbf16, #tpu.memory_space<vmem>>, vector<128x128xbf16>
      tpu.vector_store %arg8[%20, %c0_11], %19 {strides = array<i32>} : memref<256x128xbf16, #tpu.memory_space<vmem>>, vector<128x128xbf16>,
      %cst_12 = arith.constant 0.000000e+00 : f32
      %22 = vector.broadcast %cst_12 : f32 to vector<128x128xf32>
      %c0_13 = arith.constant 0 : index
      %c0_14 = arith.constant 0 : index
      %23 = vector.load %arg7[%c0_13, %c0_14] : memref<128x128xf32, #tpu.memory_space<vmem>>, vector<128x128xf32>
      tpu.vector_store %arg7[%c0_13, %c0_14], %22 {strides = array<i32>} : memref<128x128xf32, #tpu.memory_space<vmem>>, vector<128x128xf32>,
    } else {
    }
    %c1_i32 = arith.constant 1 : i32
    %5 = arith.cmpi eq, %arg0, %c1_i32 : i32
    %6 = arith.extui %5 : i1 to i32
    %c0_i32_1 = arith.constant 0 : i32
    %7 = arith.cmpi ne, %6, %c0_i32_1 : i32
    scf.if %7 {
      %c0 = arith.constant 0 : index
      %c0_2 = arith.constant 0 : index
      %8 = vector.load %arg2[%c0, %c0_2] : memref<128x256xbf16, #tpu.memory_space<vmem>>, vector<128x256xbf16>
      %c0_3 = arith.constant 0 : index
      %c0_4 = arith.constant 0 : index
      %9 = vector.load %arg8[%c0_3, %c0_4] : memref<256x128xbf16, #tpu.memory_space<vmem>>, vector<256x128xbf16>
      %cst = arith.constant dense<0.000000e+00> : vector<128x128xf32>
      %10 = tpu.matmul %8, %9, %cst {dimension_numbers = #tpu.dot_dimension_numbers<[1], [0], [0], [1], [0, 0, 1, 1], [], []>} : vector<128x256xbf16>, vector<256x128xbf16>, vector<128x128xf32> -> vector<128x128xf32>
      %c0_5 = arith.constant 0 : index
      %c0_6 = arith.constant 0 : index
      %11 = vector.load %arg6[%c0_5, %c0_6] : memref<1x128xf32, #tpu.memory_space<vmem>>, vector<1x128xf32>
      %12 = vector.broadcast %11 : vector<1x128xf32> to vector<128x128xf32>
      %13 = arith.addf %10, %12 : vector<128x128xf32>
      %cst_7 = arith.constant dense<0xFF800000> : vector<128xf32>
      %14 = vector.multi_reduction <maximumf>, %13, %cst_7 [1] : vector<128x128xf32> to vector<128xf32>
      %15 = vector.shape_cast %14 : vector<128xf32> to vector<128x1xf32>
      %16 = vector.broadcast %15 : vector<128x1xf32> to vector<128x128xf32>
      %17 = arith.subf %13, %16 : vector<128x128xf32>
      %18 = math.exp %17 : vector<128x128xf32>
      %cst_8 = arith.constant dense<0.000000e+00> : vector<128xf32>
      %19 = vector.multi_reduction <add>, %18, %cst_8 [1] : vector<128x128xf32> to vector<128xf32>
      %20 = vector.shape_cast %19 : vector<128xf32> to vector<128x1xf32>
      %21 = math.log %20 : vector<128x1xf32>
      %22 = vector.broadcast %21 : vector<128x1xf32> to vector<128x128xf32>
      %23 = arith.subf %17, %22 : vector<128x128xf32>
      %c0_9 = arith.constant 0 : index
      %c0_10 = arith.constant 0 : index
      %24 = vector.load %arg7[%c0_9, %c0_10] : memref<128x128xf32, #tpu.memory_space<vmem>>, vector<128x128xf32>
      tpu.vector_store %arg7[%c0_9, %c0_10], %23 {strides = array<i32>} : memref<128x128xf32, #tpu.memory_space<vmem>>, vector<128x128xf32>,
    } else {
    }
    return
  }
  func.func @transform_0(%arg0: i32, %arg1: i32) -> (i32, i32) {
    %c0_i32 = arith.constant 0 : i32
    %c0_i32_0 = arith.constant 0 : i32
    return %arg1, %c0_i32 : i32, i32
  }
  func.func @transform_1(%arg0: i32, %arg1: i32) -> (i32, i32) {
    %c0_i32 = arith.constant 0 : i32
    %c0_i32_0 = arith.constant 0 : i32
    %c0_i32_1 = arith.constant 0 : i32
    return %c0_i32, %c0_i32_0 : i32, i32
  }
  func.func @transform_2(%arg0: i32, %arg1: i32) -> (i32, i32) {
    %c0_i32 = arith.constant 0 : i32
    %c0_i32_0 = arith.constant 0 : i32
    %c0_i32_1 = arith.constant 0 : i32
    return %c0_i32, %c0_i32_0 : i32, i32
  }
  func.func @transform_3(%arg0: i32, %arg1: i32) -> (i32, i32) {
    %c0_i32 = arith.constant 0 : i32
    %c0_i32_0 = arith.constant 0 : i32
    %c0_i32_1 = arith.constant 0 : i32
    return %c0_i32, %c0_i32_0 : i32, i32
  }
  func.func @transform_4(%arg0: i32, %arg1: i32) -> (i32, i32) {
    %c0_i32 = arith.constant 0 : i32
    %c0_i32_0 = arith.constant 0 : i32
    %c0_i32_1 = arith.constant 0 : i32
    return %c0_i32, %c0_i32_0 : i32, i32
  }
  func.func @transform_5(%arg0: i32, %arg1: i32) -> (i32, i32) {
    %c0_i32 = arith.constant 0 : i32
    %c0_i32_0 = arith.constant 0 : i32
    return %arg1, %c0_i32 : i32, i32
  }
}

</mosaic_0001>

<bundles_post_ra>
// kernel: tpu_custom_call.1
= control target key start
LH: loop header
LB: loop body
LE: loop exit
PB: predicated region body
PF: predicated region fallthrough
CT: control target
= control target key end

     0   :  { %10 = vsyncpa [#allocation4], 0  ;;  %s2617_s0 = inlined_call_operand.hbm [shape: bf16[256,256], index: 0, kind: input, shape index: {}]   ;;  %s2618_s1 = inlined_call_operand.hbm [shape: bf16[256,128], index: 1, kind: input, shape index: {}]   ;;  %s2619_s2 = inlined_call_operand.vmem [shape: f32[1,128], index: 2, kind: input, shape index: {}]   ;;  %s2620_s3 = inlined_call_operand.hbm [shape: bf16[128,128], index: 3, kind: input, shape index: {}]   ;;  %s2621_s4 = inlined_call_operand.vmem [shape: f32[1,128], index: 4, kind: input, shape index: {}]   ;;  %s2622_s5 = inlined_call_operand.hbm [shape: f32[256,128], index: 5, kind: output, shape index: {}]  }
   0x1   :  { %12 = vsyncpa [#allocation4 + $0x1], 0 }
   0x2   :  { %13 = vsyncpa [#allocation7], 0 }
   0x3   :  { %14 = vsyncpa [#allocation5], 0 }
   0x4   :  { %16 = vsyncpa [#allocation5 + $0x1], 0  ;;  %s2107_s18 = smov 0   ;;  %s2109_s19 = smov 0  }
   0x5   :  { %s2111_s20 = smov 0   ;;  %s2113_s21 = smov 0  }
   0x6   :  { %s2115_s22 = smov 0   ;;  %s2117_s23 = smov 0  }
   0x7   :  { %s2119_s24 = smov 0   ;;  %s2121_s25 = smov 0  }
   0x8 LB: > { %2629 = sst [smem:[#allocation13_spill]] %s2036_s18  ;;  %s1357_s26 = sadd.s32 4294967295, %s2064_s25   ;;  %s2064_s25 = sphi %s2121_s25, %s22_s25   ;;  %s2060_s24 = sphi %s2119_s24, %s2653_s24   ;;  %s2056_s23 = sphi %s2117_s23, %s2652_s23   ;;  %s2052_s22 = sphi %s2115_s22, %s2651_s22   ;;  %s2048_s21 = sphi %s2113_s21, %s2650_s21   ;;  %s2044_s20 = sphi %s2111_s20, %s2649_s20   ;;  %s2040_s19 = sphi %s2109_s19, %s2648_s19   ;;  %s2036_s18 = sphi %s2107_s18, %s2647_s18  }
   0x9   : > { %s1358_s27 = sadd.s32 4294967294, %s2064_s25   ;;  %p54_p0 = scmp.ne.s32.totalorder %s2040_s19, %s2036_s18 }
   0xa   : > { %p2151_p1 = scmp.eq.s32.totalorder %s1357_s26, 0  ;;  %p2155_p2 = scmp.eq.s32.totalorder %s1357_s26, 3 }
   0xb   : > { %p168_p3 = scmp.eq.s32.totalorder %s1358_s27, 3  ;;  %p1359_p5 = scmp.ge.s32.totalorder %s2064_s25, 1 }
   0xc   : > { %s2630_s28 = scalar_select %p2151_p1, 1, 0 }
   0xd   : > { %s2631_s29 = scalar_select %p2155_p2, 1, 0 }
   0xe   : > { %p2161_p4 = por %p2151_p1, %p54_p0  ;;  %p2166_p6 = por %p168_p3, %p54_p0 }
   0xf   : > { %p175_p7 = scmp.lt.s32.totalorder %s2064_s25, 5  ;;  %s2066_s8 = smov [#allocation6]  }
  0x10   : > { %s2632_s30 = scalar_select %p2161_p4, 1, 0 }
  0x11   : > { %s2633_s6 = scalar_select %p2166_p6, 1, 0 }
  0x12   : > { %p2171_p8 = pnand %p1359_p5, %p175_p7  ;;  %s187_s9 = sshll.u32 %s2066_s8, 4  ;;  %s188_s9 = int_to_ptr.vmem [resolvable:$true] %s187_s9 }
  0x13   : > { %2634 = sst [smem:[#allocation14_spill]] %s2633_s6  ;;  %s2067_s11 = smov [#allocation8]  }
  0x14   : > { %s2635_s7 = scalar_select %p2171_p8, 1, 0 }
  0x15   : > { %p1646_p9 = pneg %p2171_p8  ;;  %s203_s12 = sshll.u32 %s2067_s11, 4  ;;  %s2183_s12 = int_to_ptr.vmem [resolvable:$true] %s203_s12 }
  0x16   : > { %s1876_s15 = scalar_lea.hbm %s2618_s1, 2048 }
  0x17   : > { %p2179_p10 = pnand %p1646_p9, %p2151_p1  ;;  %p1877_p11 = scmp.ne.s32.totalorder %s2618_s1, %s1876_s15 }
  0x18   : > { %p1883_p3 = scmp.lt.u32.totalorder %s1876_s15, %s2618_s1 }
  0x19   : > { %p1878_p12 = pneg %p2179_p10 }
  0x1b   : > { %p1879_p13 = pnand %p1878_p12, %p1877_p11 }
  0x1d   : > { %p1880_p0 = pneg %p1879_p13 }
  0x1f   : > { %p1885_p5 = pnand %p1883_p3, %p1880_p0 }
  0x21   : > { %1888 = shalt.err (!%p1885_p5)
}
  0x22   : > { %s1889_s8 = scalar_lea.vmem %s188_s9, 2048  ;;  %p1897_p1 = scmp.lt.s32.totalorder %s188_s9, %s188_s9 }
  0x23   : > { %p1890_p7 = scmp.ne.s32.totalorder %s188_s9, %s1889_s8  ;;  %p1898_p4 = scmp.lt.s32.totalorder %s1889_s8, %s1889_s8 }
  0x25   : > { %p1892_p9 = pnand %p1890_p7, %p1878_p12  ;;  %p1899_p8 = por %p1898_p4, %p1897_p1 }
  0x27   : > { %p1893_p6 = pneg %p1892_p9 }
  0x29   : > { %p1900_p2 = pnand %p1899_p8, %p1893_p6 }
  0x2b   : > { %1903 = shalt.err (!%p1900_p2)
}
  0x2c   : > { %s2068_s11 = smov 64   ;;  %s2069_s13 = smov 4  }
  0x2d   : > { %1649 = dma.hbm_to_vmem [thread:$0]  (!%p2179_p10), %s2618_s1, 2048, %s188_s9, [#allocation7], %s2068_s11, %s2068_s11, %s2069_s13  }
  0x2e   : > { %s1904_s26 = scalar_lea.hbm %s2620_s3, 1024 }
  0x2f   : > { %p1905_p11 = scmp.ne.s32.totalorder %s2620_s3, %s1904_s26  ;;  %p1911_p4 = scmp.lt.u32.totalorder %s1904_s26, %s2620_s3 }
  0x31   : > { %p1907_p1 = pnand %p1905_p11, %p1878_p12 }
  0x33   : > { %p1908_p2 = pneg %p1907_p1 }
  0x35   : > { %p1913_p6 = pnand %p1911_p4, %p1908_p2 }
  0x37   : > { %1916 = shalt.err (!%p1913_p6)
}
  0x38   : > { %s1917_s9 = scalar_lea.vmem %s2183_s12, 1024  ;;  %p1925_p3 = scmp.lt.s32.totalorder %s2183_s12, %s2183_s12 }
  0x39   : > { %p1918_p8 = scmp.ne.s32.totalorder %s2183_s12, %s1917_s9  ;;  %p1926_p5 = scmp.lt.s32.totalorder %s1917_s9, %s1917_s9 }
  0x3b   : > { %p1920_p13 = pnand %p1918_p8, %p1878_p12  ;;  %p1927_p7 = por %p1926_p5, %p1925_p3 }
  0x3d   : > { %p1921_p0 = pneg %p1920_p13 }
  0x3f   : > { %p1928_p9 = pnand %p1927_p7, %p1921_p0 }
  0x41   : > { %1931 = shalt.err (!%p1928_p9)
}
  0x42   : > { %1652 = dma.hbm_to_vmem [thread:$0]  (!%p2179_p10), %s2620_s3, 1024, %s2183_s12, [#allocation7], %s2068_s11, %s2068_s11, %s2069_s13  }
  0x43   : > { %s31_s14 = sadd.s32 1, %s2056_s23  ;;  %s34_s15 = sadd.s32 1, %s2060_s24 }
  0x44   : > { %p32_p12 = scmp.ge.s32.totalorder %s31_s14, 2  ;;  %s41_s10 = sadd.s32 1, %s2044_s20 }
  0x45   : > { %p48_p11 = scmp.ne.s32.totalorder %s2044_s20, %s2040_s19  ;;  %p49_p1 = scmp.eq.s32.totalorder %s2064_s25, 0 }
  0x46   : > { %s2655_s14 = smov (%p32_p12, %s31_s14), 0  ;;  %s2657_s15 = smov (!%p32_p12, %s34_s15), %s2060_s24 }
  0x47   : > { %s38_s16 = ssub.s32 %s2056_s23, %s2655_s14  ;;  %p2243_p2 = por %p49_p1, %p48_p11 }
  0x48   : > { %p36_p10 = scmp.ge.s32.totalorder %s2657_s15, 2  ;;  %p39_p4 = scmp.eq.s32.totalorder %s38_s16, 0 }
  0x49   : > { %p2638_p6 = scmp.ne.s32.totalorder %s2631_s29, 0  ;;  %p1663_p13 = scmp.lt.s32.totalorder %s2064_s25, 4 }
  0x4a   : > { %s2659_s15 = smov (%p36_p10, %s2657_s15), 0  ;;  %s220_s13 = sand.u32 1, %s2044_s20  }
  0x4b   : > { %p2249_p8 = por %p2638_p6, %p48_p11  ;;  %s1440_s26 = sshll.u32 %s2056_s23, 11 }
  0x4c   : > { %s2257_s11 = scalar_select %p39_p4, %s2044_s20, %s41_s10  }
  0x4d   : > { %s1363_s27 = sshll.u32 %s220_s13, 7  ;;  %s2264_s18 = scalar_lea.hbm %s2617_s0, %s1440_s26 }
  0x4e   : > { %s224_s29 = scalar_lea.vmem [#allocation3], %s1363_s27  ;;  %p2268_p0 = pnand %p1663_p13, %p2243_p2 }
  0x4f   : > { %s232_s6 = sshll.u32 %s224_s29, 4  ;;  %s2274_s10 = scalar_lea.sflag [#allocation4], %s220_s13  ;;  %s2272_s6 = int_to_ptr.vmem [resolvable:$true] %s232_s6 }
  0x50   : > { %s1932_s8 = scalar_lea.hbm %s2264_s18, 2048  ;;  %p1934_p5 = pneg %p2268_p0 }
  0x51   : > { %p1933_p3 = scmp.ne.s32.totalorder %s2264_s18, %s1932_s8  ;;  %s1937_s27 = scalar_lea.hbm %s2617_s0, 4096 }
  0x52   : > { %p1938_p12 = scmp.lt.u32.totalorder %s2264_s18, %s2617_s0  ;;  %p1939_p11 = scmp.lt.u32.totalorder %s1937_s27, %s1932_s8 }
  0x53   : > { %p1935_p7 = pnand %p1934_p5, %p1933_p3  ;;  %p1941_p2 = scmp.lt.u32.totalorder %s1932_s8, %s2264_s18 }
  0x54   : > { %p1940_p1 = por %p1939_p11, %p1938_p12 }
  0x55   : > { %p1936_p9 = pneg %p1935_p7 }
  0x56   : > { %p1942_p10 = por %p1941_p2, %p1940_p1 }
  0x58   : > { %p1943_p4 = pnand %p1942_p10, %p1936_p9 }
  0x5a   : > { %1946 = shalt.err (!%p1943_p4)
}
  0x5b   : > { %s1947_s13 = scalar_lea.vmem %s2272_s6, 2048  ;;  %s2070_s26 = smov [#allocation3]  }
  0x5c   : > { %p1948_p6 = scmp.ne.s32.totalorder %s2272_s6, %s1947_s13  ;;  %s1952_s17 = sshll.u32 %s2070_s26, 4  ;;  %s1953_s17 = int_to_ptr.vmem [resolvable:$false] %s1952_s17 }
  0x5d   : > { %s1954_s9 = scalar_lea.vmem %s1953_s17, 4096  ;;  %p1955_p7 = scmp.lt.s32.totalorder %s2272_s6, %s1953_s17 }
  0x5e   : > { %p1950_p13 = pnand %p1948_p6, %p1934_p5  ;;  %p1956_p12 = scmp.lt.s32.totalorder %s1954_s9, %s1947_s13 }
  0x60   : > { %p1951_p3 = pneg %p1950_p13  ;;  %p1957_p11 = por %p1956_p12, %p1955_p7 }
  0x62   : > { %p1958_p1 = pnand %p1957_p11, %p1951_p3 }
  0x64   : > { %1961 = shalt.err (!%p1958_p1)
}
  0x65   : > { %s2071_s8 = smov 128   ;;  %s2072_s27 = smov 8  }
  0x66   : > { %1656 = dma.hbm_to_vmem [thread:$0]  (!%p2268_p0), %s2264_s18, 2048, %s2272_s6, %s2274_s10, %s2071_s8, %s2071_s8, %s2072_s27  }
  0x67   : > { %p2641_p5 = scmp.ne.s32.totalorder %s2635_s7, 0 }
  0x68   : > { %s2305_s29 = sand.u32 (!%p2641_p5), 1, %s2040_s19   ;;  %p2642_p9 = scmp.ne.s32.totalorder (!%p2641_p5), %s2632_s30, 0 }
  0x69   : > { %244 = sbr.rel (%p2641_p5) target bundleno = 1281 (0x501), region = 40  ;;  %s1368_s13 = sshll.u32 (!%p2641_p5), %s2305_s29, 7 }
  0x6a   : > { %s247_s26 = scalar_lea.sflag (!%p2641_p5), [#allocation4], %s2305_s29  ;;  %s2309_s17 = scalar_lea.vmem (!%p2641_p5), [#allocation3], %s1368_s13 }
  0x70   : > { %2023 = dma.done.wait (%p2642_p9), %s247_s26, 2048  }
  0x71   : > { %2025 = vsyncadd (%p2642_p9), %s247_s26, 4294965248  ;;  %p2643_p0 = scmp.ne.s32.totalorder %s2630_s28, 0 }
  0x73   : > { %2027 = dma.done.wait (%p2643_p0), [#allocation7], 3072  }
  0x74   : > { %2029 = vsyncadd (%p2643_p0), [#allocation7], 4294964224  ;;  %s1372_s7 = sshll.u32 %s2048_s21, 7  ;;  %s2320_s18 = scalar_lea.vmem [#allocation9], %s1368_s13 }
  0x75   : > { %p1373_p2 = scmp.ne.s32.totalorder %s2052_s22, 0 }
  0x76   : > { %v1740_v0 = vld [vmem:[#allocation6 + $0x40] sm:$0xff] (!%p1373_p2)   ;;  %v1742_v2 = vld [vmem:[#allocation6 + $0x48] sm:$0xff] (!%p1373_p2)   ;;  %v1744_v4 = vld [vmem:[#allocation6 + $0x50] sm:$0xff] (!%p1373_p2)   ;;  %s814_s6 = sshra.s32 (!%p1373_p2), %s1372_s7, 4 }
  0x77   : > { %292 = sbr.rel (%p1373_p2) target bundleno = 648 (0x288), region = 56  ;;  %v1741_v1 = vld [vmem:[#allocation6] sm:$0xff] (!%p1373_p2)   ;;  %1442 = vmatprep.subr.bf16.mxu0 (!%p1373_p2), %v1740_v0  ;;  %v1743_v3 = vld [vmem:[#allocation6 + $0x8] sm:$0xff] (!%p1373_p2)   ;;  %v1745_v5 = vld [vmem:[#allocation6 + $0x10] sm:$0xff] (!%p1373_p2)   ;;  %s1415_s16 = sshll.u32 (!%p1373_p2), %s814_s6, 3 }
  0x78   : > { %1443 = vmatpush3.bf16.msra.mxu0 (!%p1373_p2), %v1741_v1  ;;  %v1746_v6 = vld [vmem:[#allocation6 + $0x58] sm:$0xff] (!%p1373_p2)   ;;  %v1748_v8 = vld [vmem:[#allocation6 + $0x60] sm:$0xff] (!%p1373_p2)   ;;  %v1750_v10 = vld [vmem:[#allocation6 + $0x68] sm:$0xff] (!%p1373_p2)   ;;  %s817_s10 = scalar_lea.vmem (!%p1373_p2), [#allocation2], %s1415_s16 }
  0x79   : > { %1444 = vmatprep.subr.bf16.mxu0 (!%p1373_p2), %v1742_v2  ;;  %v1747_v7 = vld [vmem:[#allocation6 + $0x18] sm:$0xff] (!%p1373_p2)   ;;  %v1749_v9 = vld [vmem:[#allocation6 + $0x20] sm:$0xff] (!%p1373_p2)   ;;  %v1751_v12 = vld [vmem:[#allocation6 + $0x28] sm:$0xff] (!%p1373_p2)  }
  0x7a   : > { %v1758_v11 = vld [vmem:[%s2309_s17 + $0x4] ss:$8 sps:$4 sm:$0xff] (!%p1373_p2)   ;;  %v1752_v13 = vld [vmem:[#allocation6 + $0x70] sm:$0xff] (!%p1373_p2)   ;;  %v1754_v15 = vld [vmem:[#allocation6 + $0x78] sm:$0xff] (!%p1373_p2)  }
  0x7b   : > { %556 = vmatprep.mubr.bf16.mxu0 (!%p1373_p2), %v1758_v11  ;;  %v1753_v14 = vld [vmem:[#allocation6 + $0x30] sm:$0xff] (!%p1373_p2)   ;;  %v1755_v16 = vld [vmem:[#allocation6 + $0x38] sm:$0xff] (!%p1373_p2)   ;;  %v1780_v17 = vld [vmem:[#allocation8] sm:$0xff] (!%p1373_p2)  }
  0x7c   : > { %1445 = vmatpush3.bf16.msra.mxu0 (!%p1373_p2), %v1743_v3  ;;  %v1756_v18 = vld [vmem:[%s2309_s17] ss:$8 sps:$4 sm:$0xff] (!%p1373_p2)   ;;  %v1759_v20 = vld [vmem:[%s2309_s17 + $0x14] ss:$8 sps:$4 sm:$0xff] (!%p1373_p2)   ;;  %1586 = vmatprep.subr.bf16.mxu1 (!%p1373_p2), %v1780_v17  ;;  %v1761_v22 = vld [vmem:[%s2309_s17 + $0x10] ss:$8 sps:$4 sm:$0xff] (!%p1373_p2)  }
  0x7d   : > { %1446 = vmatprep.subr.bf16.mxu0 (!%p1373_p2), %v1744_v4  ;;  %v1781_v19 = vld [vmem:[#allocation8 + $0x8] sm:$0xff] (!%p1373_p2)   ;;  %v1782_v21 = vld [vmem:[#allocation8 + $0x10] sm:$0xff] (!%p1373_p2)   ;;  %1587 = vmatpush3.bf16.msra.mxu1 (!%p1373_p2), %v1780_v17  ;;  %v1783_v35 = vld [vmem:[#allocation8 + $0x18] sm:$0xff] (!%p1373_p2)  }
  0x7e   : > { %1588 = vmatprep.subr.bf16.mxu1 %v1781_v19  ;;  %v1762_v23 = vld [vmem:[%s2309_s17 + $0x24] ss:$8 sps:$4 sm:$0xff]   ;;  %v1764_v24 = vld [vmem:[%s2309_s17 + $0x20] ss:$8 sps:$4 sm:$0xff]   ;;  %v1765_v25 = vld [vmem:[%s2309_s17 + $0x34] ss:$8 sps:$4 sm:$0xff]  }
  0x7f   : > { %v1767_v26 = vld [vmem:[%s2309_s17 + $0x30] ss:$8 sps:$4 sm:$0xff]   ;;  %v1768_v27 = vld [vmem:[%s2309_s17 + $0x44] ss:$8 sps:$4 sm:$0xff]   ;;  %v1770_v28 = vld [vmem:[%s2309_s17 + $0x40] ss:$8 sps:$4 sm:$0xff]  }
  0x80   : > { %1447 = vmatpush3.bf16.msra.mxu0 %v1745_v5  ;;  %v1771_v29 = vld [vmem:[%s2309_s17 + $0x54] ss:$8 sps:$4 sm:$0xff]   ;;  %v1773_v30 = vld [vmem:[%s2309_s17 + $0x50] ss:$8 sps:$4 sm:$0xff]   ;;  %v1774_v31 = vld [vmem:[%s2309_s17 + $0x64] ss:$8 sps:$4 sm:$0xff]  }
  0x81   : > { %1448 = vmatprep.subr.bf16.mxu0 %v1746_v6  ;;  %1589 = vmatpush3.bf16.msra.mxu1 %v1781_v19  ;;  %v1776_v32 = vld [vmem:[%s2309_s17 + $0x60] ss:$8 sps:$4 sm:$0xff]   ;;  %v1777_v33 = vld [vmem:[%s2309_s17 + $0x74] ss:$8 sps:$4 sm:$0xff]   ;;  %v1779_v34 = vld [vmem:[%s2309_s17 + $0x70] ss:$8 sps:$4 sm:$0xff]  }
  0x82   : > { %1590 = vmatprep.subr.bf16.mxu1 %v1782_v21  ;;  %v1784_v36 = vld [vmem:[#allocation8 + $0x20] sm:$0xff]   ;;  %v1785_v37 = vld [vmem:[#allocation8 + $0x28] sm:$0xff]   ;;  %v1786_v38 = vld [vmem:[#allocation8 + $0x30] sm:$0xff]  }
  0x83   : > { %v1787_v39 = vld [vmem:[#allocation8 + $0x38] sm:$0xff]   ;;  %v2342_v42 = vld [vmem:[%s2619_s2] ss:$0 sm:$0xff] }
  0x84   : > { %1449 = vmatpush3.bf16.msra.mxu0 %v1747_v7 }
  0x85   : > { %1450 = vmatprep.subr.bf16.mxu0 %v1748_v8  ;;  %1591 = vmatpush3.bf16.msra.mxu1 %v1782_v21 }
  0x86   : > { %1592 = vmatprep.subr.bf16.mxu1 %v1783_v35 }
  0x88   : > { %1451 = vmatpush3.bf16.msra.mxu0 %v1749_v9 }
  0x89   : > { %1452 = vmatprep.subr.bf16.mxu0 %v1750_v10  ;;  %1593 = vmatpush3.bf16.msra.mxu1 %v1783_v35 }
  0x8a   : > { %1594 = vmatprep.subr.bf16.mxu1 %v1784_v36 }
  0x8c   : > { %1453 = vmatpush3.bf16.msra.mxu0 %v1751_v12 }
  0x8d   : > { %1454 = vmatprep.subr.bf16.mxu0 %v1752_v13  ;;  %1595 = vmatpush3.bf16.msra.mxu1 %v1784_v36 }
  0x8e   : > { %1596 = vmatprep.subr.bf16.mxu1 %v1785_v37 }
  0x90   : > { %1455 = vmatpush3.bf16.msra.mxu0 %v1753_v14 }
  0x91   : > { %1456 = vmatprep.subr.bf16.mxu0 %v1754_v15  ;;  %1597 = vmatpush3.bf16.msra.mxu1 %v1785_v37 }
  0x92   : > { %1598 = vmatprep.subr.bf16.mxu1 %v1786_v38 }
  0x94   : > { %1457 = vmatpush3.bf16.msra.mxu0 %v1755_v16 }
  0x95   : > { %1599 = vmatpush3.bf16.msra.mxu1 %v1786_v38 }
  0x96   : > { %1600 = vmatprep.subr.bf16.mxu1 %v1787_v39 }
  0x97   : > { %557 = vmatmul.mubr.bf16.vlgmr.msra.gmra.mrb[0].mxu0 %v1756_v18 }
  0x98   : > { %564 = vmatprep.mubr.bf16.mxu0 %v1759_v20 }
  0x99   : > { %1601 = vmatpush3.bf16.msra.mxu1 %v1787_v39 }
  0x9f   : > { %565 = vmatmul.mubr.bf16.gmra.mrb[4].mxu0 %v1761_v22 }
  0xa0   : > { %572 = vmatprep.mubr.bf16.mxu0 %v1762_v23 }
  0xa7   : > { %573 = vmatmul.mubr.bf16.gmra.mrb[8].mxu0 %v1764_v24 }
  0xa8   : > { %580 = vmatprep.mubr.bf16.mxu0 %v1765_v25 }
  0xaf   : > { %581 = vmatmul.mubr.bf16.gmra.mrb[12].mxu0 %v1767_v26 }
  0xb0   : > { %588 = vmatprep.mubr.bf16.mxu0 %v1768_v27 }
  0xb7   : > { %589 = vmatmul.mubr.bf16.gmra.mrb[16].mxu0 %v1770_v28 }
  0xb8   : > { %596 = vmatprep.mubr.bf16.mxu0 %v1771_v29 }
  0xbf   : > { %597 = vmatmul.mubr.bf16.gmra.mrb[20].mxu0 %v1773_v30 }
  0xc0   : > { %604 = vmatprep.mubr.bf16.mxu0 %v1774_v31 }
  0xc7   : > { %605 = vmatmul.mubr.bf16.gmra.mrb[24].mxu0 %v1776_v32 }
  0xc8   : > { %612 = vmatprep.mubr.bf16.mxu0 %v1777_v33 }
  0xcf   : > { %613 = vmatmul.mubr.bf16.gmra.mrb[28].mxu0 %v1779_v34 }
 0x16a   : > { %v1458_v40 = vpop.f32.mrb[0].mxu0 }
 0x16b   : > { %v1459_v41 = vpop.f32.mrb[1].mxu0 }
 0x16c   : > { %v1460_v43 = vadd.f32 %v1459_v41, %v1458_v40  ;;  %v1461_v44 = vpop.f32.mrb[2].mxu0 }
 0x16d   : > { %v1462_v45 = vpop.f32.mrb[3].mxu0 }
 0x16e   : > { %v1463_v46 = vadd.f32 %v1462_v45, %v1461_v44  ;;  %v559_v47 = vadd.f32 %v1460_v43, %v2342_v42 }
 0x170   : > { %v562_v48 = vadd.f32 %v1463_v46, %v2342_v42  ;;  %v621_v50 = vmax.f32 %v559_v47, 0.0 }
 0x172   : > { %v1464_v49 = vpop.f32.mrb[4].mxu0  ;;  %v622_v51 = vmax.f32 %v562_v48, 0.0 }
 0x173   : > { %v1465_v52 = vpop.f32.mrb[5].mxu0 }
 0x174   : > { %v1466_v53 = vadd.f32 %v1465_v52, %v1464_v49  ;;  %v1467_v54 = vpop.f32.mrb[6].mxu0  ;;  %v637_v55 = vpack.c.bf16 %v622_v51, %v621_v50 }
 0x175   : > { %v1468_v56 = vpop.f32.mrb[7].mxu0 }
 0x176   : > { %v567_v57 = vadd.f32 %v1466_v53, %v2342_v42  ;;  %v1469_v58 = vadd.f32 %v1468_v56, %v1467_v54  ;;  %1602 = vmatprep.mubr.bf16.mxu1 %v637_v55 }
 0x178   : > { %v570_v59 = vadd.f32 %v1469_v58, %v2342_v42  ;;  %v623_v60 = vmax.f32 %v567_v57, 0.0 }
 0x17a   : > { %v624_v61 = vmax.f32 %v570_v59, 0.0  ;;  %v1470_v62 = vpop.f32.mrb[8].mxu0 }
 0x17b   : > { %v1471_v63 = vpop.f32.mrb[9].mxu0 }
 0x17c   : > { %v1472_v0 = vadd.f32 %v1471_v63, %v1470_v62  ;;  %v1473_v1 = vpop.f32.mrb[10].mxu0  ;;  %v638_v2 = vpack.c.bf16 %v624_v61, %v623_v60 }
 0x17d   : > { %v1474_v3 = vpop.f32.mrb[11].mxu0 }
 0x17e   : > { %v575_v4 = vadd.f32 %v1472_v0, %v2342_v42  ;;  %v1475_v5 = vadd.f32 %v1474_v3, %v1473_v1  ;;  %1603 = vmatmul.mubr.bf16.vlgmr.msra.gmra.mrb[0].mxu1 %v638_v2  ;;  %v2073_v2 = vmov 0.0  }
 0x17f   : > { %826 = vst [vmem:[%s2320_s18] sm:$0xff] %v2073_v2  ;;  %827 = vst [vmem:[%s2320_s18 + $0x8] sm:$0xff] %v2073_v2 }
 0x180   : > { %v578_v6 = vadd.f32 %v1475_v5, %v2342_v42  ;;  %v625_v7 = vmax.f32 %v575_v4, 0.0  ;;  %828 = vst [vmem:[%s2320_s18 + $0x10] sm:$0xff] %v2073_v2  ;;  %829 = vst [vmem:[%s2320_s18 + $0x18] sm:$0xff] %v2073_v2 }
 0x181   : > { %830 = vst [vmem:[%s2320_s18 + $0x20] sm:$0xff] %v2073_v2  ;;  %831 = vst [vmem:[%s2320_s18 + $0x28] sm:$0xff] %v2073_v2 }
 0x182   : > { %v626_v8 = vmax.f32 %v578_v6, 0.0  ;;  %v1476_v9 = vpop.f32.mrb[12].mxu0  ;;  %832 = vst [vmem:[%s2320_s18 + $0x30] sm:$0xff] %v2073_v2  ;;  %833 = vst [vmem:[%s2320_s18 + $0x38] sm:$0xff] %v2073_v2 }
 0x183   : > { %v1477_v10 = vpop.f32.mrb[13].mxu0  ;;  %834 = vst [vmem:[%s2320_s18 + $0x40] sm:$0xff] %v2073_v2  ;;  %835 = vst [vmem:[%s2320_s18 + $0x48] sm:$0xff] %v2073_v2 }
 0x184   : > { %v1478_v11 = vadd.f32 %v1477_v10, %v1476_v9  ;;  %v1479_v12 = vpop.f32.mrb[14].mxu0  ;;  %v639_v13 = vpack.c.bf16 %v626_v8, %v625_v7  ;;  %836 = vst [vmem:[%s2320_s18 + $0x50] sm:$0xff] %v2073_v2  ;;  %837 = vst [vmem:[%s2320_s18 + $0x58] sm:$0xff] %v2073_v2 }
 0x185   : > { %v1480_v14 = vpop.f32.mrb[15].mxu0  ;;  %838 = vst [vmem:[%s2320_s18 + $0x60] sm:$0xff] %v2073_v2  ;;  %839 = vst [vmem:[%s2320_s18 + $0x68] sm:$0xff] %v2073_v2 }
 0x186   : > { %v583_v15 = vadd.f32 %v1478_v11, %v2342_v42  ;;  %v1481_v16 = vadd.f32 %v1480_v14, %v1479_v12  ;;  %1606 = vmatprep.mubr.bf16.mxu1 %v639_v13  ;;  %840 = vst [vmem:[%s2320_s18 + $0x70] sm:$0xff] %v2073_v2  ;;  %841 = vst [vmem:[%s2320_s18 + $0x78] sm:$0xff] %v2073_v2 }
 0x188   : > { %v586_v17 = vadd.f32 %v1481_v16, %v2342_v42  ;;  %v627_v18 = vmax.f32 %v583_v15, 0.0 }
 0x18a   : > { %v628_v19 = vmax.f32 %v586_v17, 0.0  ;;  %v1482_v20 = vpop.f32.mrb[16].mxu0 }
 0x18b   : > { %v1483_v21 = vpop.f32.mrb[17].mxu0 }
 0x18c   : > { %v1484_v22 = vadd.f32 %v1483_v21, %v1482_v20  ;;  %v1485_v23 = vpop.f32.mrb[18].mxu0  ;;  %v640_v24 = vpack.c.bf16 %v628_v19, %v627_v18 }
 0x18d   : > { %v1486_v25 = vpop.f32.mrb[19].mxu0 }
 0x18e   : > { %v591_v26 = vadd.f32 %v1484_v22, %v2342_v42  ;;  %v1487_v27 = vadd.f32 %v1486_v25, %v1485_v23  ;;  %1607 = vmatmul.mubr.bf16.gmra.mrb[4].mxu1 %v640_v24 }
 0x190   : > { %v594_v28 = vadd.f32 %v1487_v27, %v2342_v42  ;;  %v629_v29 = vmax.f32 %v591_v26, 0.0 }
 0x192   : > { %v630_v30 = vmax.f32 %v594_v28, 0.0  ;;  %v1488_v31 = vpop.f32.mrb[20].mxu0 }
 0x193   : > { %v1489_v32 = vpop.f32.mrb[21].mxu0 }
 0x194   : > { %v1490_v33 = vadd.f32 %v1489_v32, %v1488_v31  ;;  %v1491_v34 = vpop.f32.mrb[22].mxu0  ;;  %v641_v35 = vpack.c.bf16 %v630_v30, %v629_v29 }
 0x195   : > { %v1492_v36 = vpop.f32.mrb[23].mxu0 }
 0x196   : > { %v599_v37 = vadd.f32 %v1490_v33, %v2342_v42  ;;  %v1493_v38 = vadd.f32 %v1492_v36, %v1491_v34  ;;  %1610 = vmatprep.mubr.bf16.mxu1 %v641_v35 }
 0x198   : > { %v602_v39 = vadd.f32 %v1493_v38, %v2342_v42  ;;  %v631_v40 = vmax.f32 %v599_v37, 0.0 }
 0x19a   : > { %v632_v41 = vmax.f32 %v602_v39, 0.0  ;;  %v1494_v43 = vpop.f32.mrb[24].mxu0 }
 0x19b   : > { %v1495_v44 = vpop.f32.mrb[25].mxu0 }
 0x19c   : > { %v1496_v45 = vadd.f32 %v1495_v44, %v1494_v43  ;;  %v1497_v46 = vpop.f32.mrb[26].mxu0  ;;  %v642_v47 = vpack.c.bf16 %v632_v41, %v631_v40 }
 0x19d   : > { %v1498_v48 = vpop.f32.mrb[27].mxu0 }
 0x19e   : > { %v607_v49 = vadd.f32 %v1496_v45, %v2342_v42  ;;  %v1499_v50 = vadd.f32 %v1498_v48, %v1497_v46  ;;  %1611 = vmatmul.mubr.bf16.gmra.mrb[8].mxu1 %v642_v47 }
 0x1a0   : > { %v610_v51 = vadd.f32 %v1499_v50, %v2342_v42  ;;  %v633_v52 = vmax.f32 %v607_v49, 0.0 }
 0x1a2   : > { %v634_v53 = vmax.f32 %v610_v51, 0.0  ;;  %v1500_v54 = vpop.f32.mrb[28].mxu0 }
 0x1a3   : > { %v1501_v55 = vpop.f32.mrb[29].mxu0 }
 0x1a4   : > { %v1502_v56 = vadd.f32 %v1501_v55, %v1500_v54  ;;  %v1503_v57 = vpop.f32.mrb[30].mxu0  ;;  %v643_v58 = vpack.c.bf16 %v634_v53, %v633_v52 }
 0x1a5   : > { %v1504_v59 = vpop.f32.mrb[31].mxu0 }
 0x1a6   : > { %v615_v60 = vadd.f32 %v1502_v56, %v2342_v42  ;;  %v1505_v61 = vadd.f32 %v1504_v59, %v1503_v57  ;;  %1614 = vmatprep.mubr.bf16.mxu1 %v643_v58 }
 0x1a8   : > { %v618_v62 = vadd.f32 %v1505_v61, %v2342_v42  ;;  %v635_v63 = vmax.f32 %v615_v60, 0.0 }
 0x1aa   : > { %v636_v0 = vmax.f32 %v618_v62, 0.0 }
 0x1ac   : > { %v644_v1 = vpack.c.bf16 %v636_v0, %v635_v63 }
 0x1ae   : > { %1615 = vmatmul.mubr.bf16.gmra.mrb[12].mxu1 %v644_v1 }
 0x251   : > { %v1604_v42 = vpop.f32.mrb[0].mxu1 }
 0x252   : > { %v743_v3 = vpop.f32.mrb[1].mxu1 }
 0x253   : > { %v1605_v4 = vpop.f32.mrb[2].mxu1 }
 0x254   : > { %v807_v5 = vpack.c.bf16 %v1605_v4, %v1604_v42  ;;  %v746_v6 = vpop.f32.mrb[3].mxu1 }
 0x255   : > { %v806_v7 = vpack.c.bf16 %v746_v6, %v743_v3 }
 0x256   : > { %819 = vst [vmem:[%s817_s10 + $0x8] sm:$0xff] %v807_v5 }
 0x257   : > { %818 = vst [vmem:[%s817_s10] sm:$0xff] %v806_v7 }
 0x261   : > { %v1608_v8 = vpop.f32.mrb[4].mxu1 }
 0x262   : > { %v759_v9 = vpop.f32.mrb[5].mxu1 }
 0x263   : > { %v1609_v10 = vpop.f32.mrb[6].mxu1 }
 0x264   : > { %v809_v11 = vpack.c.bf16 %v1609_v10, %v1608_v8  ;;  %v762_v12 = vpop.f32.mrb[7].mxu1 }
 0x265   : > { %v808_v13 = vpack.c.bf16 %v762_v12, %v759_v9 }
 0x266   : > { %821 = vst [vmem:[%s817_s10 + $0x18] sm:$0xff] %v809_v11 }
 0x267   : > { %820 = vst [vmem:[%s817_s10 + $0x10] sm:$0xff] %v808_v13 }
 0x271   : > { %v1612_v14 = vpop.f32.mrb[8].mxu1 }
 0x272   : > { %v775_v15 = vpop.f32.mrb[9].mxu1 }
 0x273   : > { %v1613_v16 = vpop.f32.mrb[10].mxu1 }
 0x274   : > { %v811_v17 = vpack.c.bf16 %v1613_v16, %v1612_v14  ;;  %v778_v18 = vpop.f32.mrb[11].mxu1 }
 0x275   : > { %v810_v19 = vpack.c.bf16 %v778_v18, %v775_v15 }
 0x276   : > { %823 = vst [vmem:[%s817_s10 + $0x28] sm:$0xff] %v811_v17 }
 0x277   : > { %822 = vst [vmem:[%s817_s10 + $0x20] sm:$0xff] %v810_v19 }
 0x281   : > { %v1616_v20 = vpop.f32.mrb[12].mxu1 }
 0x282   : > { %v791_v21 = vpop.f32.mrb[13].mxu1 }
 0x283   : > { %v1617_v22 = vpop.f32.mrb[14].mxu1 }
 0x284   : > { %v813_v23 = vpack.c.bf16 %v1617_v22, %v1616_v20  ;;  %v794_v24 = vpop.f32.mrb[15].mxu1 }
 0x285   : > { %v812_v25 = vpack.c.bf16 %v794_v24, %v791_v21 }
 0x286   : > { %825 = vst [vmem:[%s817_s10 + $0x38] sm:$0xff] %v813_v23 }
 0x287   : > { %824 = vst [vmem:[%s817_s10 + $0x30] sm:$0xff] %v812_v25 }
 0x288 PF: > { %p1416_p10 = scmp.ne.s32.totalorder %s2052_s22, 1 }
 0x289   : > { %v1790_v31 = vld [vmem:[%s2309_s17 + $0x4] ss:$8 sps:$4 sm:$0xff] (!%p1416_p10)   ;;  %v1788_v45 = vld [vmem:[%s2309_s17] ss:$8 sps:$4 sm:$0xff] (!%p1416_p10)   ;;  %v1794_v47 = vld [vmem:[%s2309_s17 + $0x14] ss:$8 sps:$4 sm:$0xff] (!%p1416_p10)  }
 0x28a   : > { %845 = sbr.rel (%p1416_p10) target bundleno = 1256 (0x4e8), region = 60  ;;  %v1793_v33 = vld [vmem:[%s2309_s17 + $0x44] ss:$8 sps:$4 sm:$0xff] (!%p1416_p10)   ;;  %997 = vmatprep.mubr.bf16.mxu0 (!%p1416_p10), %v1790_v31  ;;  %v1791_v46 = vld [vmem:[%s2309_s17 + $0x40] ss:$8 sps:$4 sm:$0xff] (!%p1416_p10)  }
 0x28b   : > { %1029 = vmatprep.mubr.bf16.mxu1 (!%p1416_p10), %v1793_v33  ;;  %v1797_v48 = vld [vmem:[%s2309_s17 + $0x54] ss:$8 sps:$4 sm:$0xff] (!%p1416_p10)   ;;  %v1796_v49 = vld [vmem:[%s2309_s17 + $0x10] ss:$8 sps:$4 sm:$0xff] (!%p1416_p10)   ;;  %v1800_v51 = vld [vmem:[%s2309_s17 + $0x24] ss:$8 sps:$4 sm:$0xff] (!%p1416_p10)  }
 0x28c   : > { %v1799_v50 = vld [vmem:[%s2309_s17 + $0x50] ss:$8 sps:$4 sm:$0xff] (!%p1416_p10)   ;;  %v1803_v52 = vld [vmem:[%s2309_s17 + $0x64] ss:$8 sps:$4 sm:$0xff] (!%p1416_p10)   ;;  %v1802_v53 = vld [vmem:[%s2309_s17 + $0x20] ss:$8 sps:$4 sm:$0xff] (!%p1416_p10)  }
 0x28d   : > { %v1805_v54 = vld [vmem:[%s2309_s17 + $0x60] ss:$8 sps:$4 sm:$0xff] (!%p1416_p10)   ;;  %v1806_v55 = vld [vmem:[%s2309_s17 + $0x34] ss:$8 sps:$4 sm:$0xff] (!%p1416_p10)   ;;  %v1808_v57 = vld [vmem:[%s2309_s17 + $0x30] ss:$8 sps:$4 sm:$0xff] (!%p1416_p10)  }
 0x28e   : > { %v870_v26 = vld [vmem:[#allocation2 + $0x40] sm:$0xff] (!%p1416_p10)  ;;  %v871_v28 = vld [vmem:[#allocation2 + $0x48] sm:$0xff] (!%p1416_p10)  ;;  %v872_v30 = vld [vmem:[#allocation2 + $0x50] sm:$0xff] (!%p1416_p10) }
 0x28f   : > { %v862_v27 = vld [vmem:[#allocation2] sm:$0xff] (!%p1416_p10)  ;;  %1522 = vmatprep.subr.bf16.mxu0 (!%p1416_p10), %v870_v26  ;;  %1618 = vmatprep.subr.bf16.mxu1 (!%p1416_p10), %v870_v26  ;;  %v863_v29 = vld [vmem:[#allocation2 + $0x8] sm:$0xff] (!%p1416_p10)  ;;  %v864_v32 = vld [vmem:[#allocation2 + $0x10] sm:$0xff] (!%p1416_p10) }
 0x290   : > { %1523 = vmatpush3.bf16.msra.mxu0 (!%p1416_p10), %v862_v27  ;;  %1626 = vmatpush3.bf16.msra.mxu1 (!%p1416_p10), %v862_v27  ;;  %v873_v34 = vld [vmem:[#allocation2 + $0x58] sm:$0xff] (!%p1416_p10)  ;;  %v874_v36 = vld [vmem:[#allocation2 + $0x60] sm:$0xff] (!%p1416_p10)  ;;  %v875_v38 = vld [vmem:[#allocation2 + $0x68] sm:$0xff] (!%p1416_p10) }
 0x291   : > { %1524 = vmatprep.subr.bf16.mxu0 %v871_v28  ;;  %1619 = vmatprep.subr.bf16.mxu1 %v871_v28  ;;  %v865_v35 = vld [vmem:[#allocation2 + $0x18] sm:$0xff]  ;;  %v866_v37 = vld [vmem:[#allocation2 + $0x20] sm:$0xff]  ;;  %v867_v39 = vld [vmem:[#allocation2 + $0x28] sm:$0xff] }
 0x292   : > { %v876_v40 = vld [vmem:[#allocation2 + $0x70] sm:$0xff]  ;;  %v877_v43 = vld [vmem:[#allocation2 + $0x78] sm:$0xff]  ;;  %v2398_v63 = vld [vmem:[%s2621_s4] ss:$0 sm:$0xff] }
 0x293   : > { %v868_v41 = vld [vmem:[#allocation2 + $0x30] sm:$0xff]  ;;  %v869_v44 = vld [vmem:[#allocation2 + $0x38] sm:$0xff] }
 0x294   : > { %1525 = vmatpush3.bf16.msra.mxu0 %v863_v29  ;;  %1627 = vmatpush3.bf16.msra.mxu1 %v863_v29  ;;  %v1809_v56 = vld [vmem:[%s2309_s17 + $0x74] ss:$8 sps:$4 sm:$0xff]   ;;  %v1811_v58 = vld [vmem:[%s2309_s17 + $0x70] ss:$8 sps:$4 sm:$0xff]  }
 0x295   : > { %1526 = vmatprep.subr.bf16.mxu0 %v872_v30  ;;  %1620 = vmatprep.subr.bf16.mxu1 %v872_v30 }
 0x298   : > { %1527 = vmatpush3.bf16.msra.mxu0 %v864_v32  ;;  %1628 = vmatpush3.bf16.msra.mxu1 %v864_v32 }
 0x299   : > { %1528 = vmatprep.subr.bf16.mxu0 %v873_v34  ;;  %1621 = vmatprep.subr.bf16.mxu1 %v873_v34 }
 0x29c   : > { %1529 = vmatpush3.bf16.msra.mxu0 %v865_v35  ;;  %1629 = vmatpush3.bf16.msra.mxu1 %v865_v35 }
 0x29d   : > { %1530 = vmatprep.subr.bf16.mxu0 %v874_v36  ;;  %1622 = vmatprep.subr.bf16.mxu1 %v874_v36 }
 0x2a0   : > { %1531 = vmatpush3.bf16.msra.mxu0 %v866_v37  ;;  %1630 = vmatpush3.bf16.msra.mxu1 %v866_v37 }
 0x2a1   : > { %1532 = vmatprep.subr.bf16.mxu0 %v875_v38  ;;  %1623 = vmatprep.subr.bf16.mxu1 %v875_v38 }
 0x2a4   : > { %1533 = vmatpush3.bf16.msra.mxu0 %v867_v39  ;;  %1631 = vmatpush3.bf16.msra.mxu1 %v867_v39 }
 0x2a5   : > { %1534 = vmatprep.subr.bf16.mxu0 %v876_v40  ;;  %1624 = vmatprep.subr.bf16.mxu1 %v876_v40 }
 0x2a8   : > { %1535 = vmatpush3.bf16.msra.mxu0 %v868_v41  ;;  %1632 = vmatpush3.bf16.msra.mxu1 %v868_v41 }
 0x2a9   : > { %1536 = vmatprep.subr.bf16.mxu0 %v877_v43  ;;  %1625 = vmatprep.subr.bf16.mxu1 %v877_v43 }
 0x2ac   : > { %1537 = vmatpush3.bf16.msra.mxu0 %v869_v44  ;;  %1633 = vmatpush3.bf16.msra.mxu1 %v869_v44 }
 0x2af   : > { %998 = vmatmul.mubr.bf16.vlgmr.msra.gmra.mrb[0].mxu0 %v1788_v45  ;;  %1030 = vmatmul.mubr.bf16.vlgmr.msra.gmra.mrb[0].mxu1 %v1791_v46 }
 0x2b0   : > { %1005 = vmatprep.mubr.bf16.mxu0 %v1794_v47  ;;  %1037 = vmatprep.mubr.bf16.mxu1 %v1797_v48 }
 0x2b7   : > { %1006 = vmatmul.mubr.bf16.gmra.mrb[4].mxu0 %v1796_v49  ;;  %1038 = vmatmul.mubr.bf16.gmra.mrb[4].mxu1 %v1799_v50 }
 0x2b8   : > { %1013 = vmatprep.mubr.bf16.mxu0 %v1800_v51  ;;  %1045 = vmatprep.mubr.bf16.mxu1 %v1803_v52 }
 0x2bf   : > { %1014 = vmatmul.mubr.bf16.gmra.mrb[8].mxu0 %v1802_v53  ;;  %1046 = vmatmul.mubr.bf16.gmra.mrb[8].mxu1 %v1805_v54 }
 0x2c0   : > { %1021 = vmatprep.mubr.bf16.mxu0 %v1806_v55  ;;  %1053 = vmatprep.mubr.bf16.mxu1 %v1809_v56 }
 0x2c7   : > { %1022 = vmatmul.mubr.bf16.gmra.mrb[12].mxu0 %v1808_v57  ;;  %1054 = vmatmul.mubr.bf16.gmra.mrb[12].mxu1 %v1811_v58 }
 0x382   : > { %v1538_v59 = vpop.f32.mrb[0].mxu0  ;;  %v1562_v60 = vpop.f32.mrb[0].mxu1 }
 0x383   : > { %v1539_v61 = vpop.f32.mrb[1].mxu0  ;;  %v1563_v62 = vpop.f32.mrb[1].mxu1 }
 0x384   : > { %v1540_v0 = vadd.f32 %v1539_v61, %v1538_v59  ;;  %v1564_v1 = vadd.f32 %v1563_v62, %v1562_v60  ;;  %v1541_v2 = vpop.f32.mrb[2].mxu0  ;;  %v1565_v42 = vpop.f32.mrb[2].mxu1 }
 0x385   : > { %v1542_v3 = vpop.f32.mrb[3].mxu0  ;;  %v1566_v4 = vpop.f32.mrb[3].mxu1 }
 0x386   : > { %v1543_v5 = vadd.f32 %v1542_v3, %v1541_v2  ;;  %v1567_v6 = vadd.f32 %v1566_v4, %v1565_v42  ;;  %v2401_v7 = vadd.f32 %v1540_v0, %v2398_v63  ;;  %v2408_v9 = vadd.f32 %v1564_v1, %v2398_v63 }
 0x388   : > { %1062 = vmax.xlane.f32.xlu0 %v2401_v7  ;;  %v2405_v8 = vadd.f32 %v1567_v6, %v2398_v63  ;;  %v2416_v22 = vadd.f32 %v1543_v5, %v2398_v63 }
 0x38a   : > { %1080 = vmax.xlane.f32.xlu1 %v2405_v8  ;;  %v1544_v10 = vpop.f32.mrb[4].mxu0  ;;  %v1568_v11 = vpop.f32.mrb[4].mxu1 }
 0x38b   : > { %v1545_v12 = vpop.f32.mrb[5].mxu0  ;;  %v1569_v13 = vpop.f32.mrb[5].mxu1 }
 0x38c   : > { %v1546_v14 = vadd.f32 %v1545_v12, %v1544_v10  ;;  %1078 = vmax.xlane.f32.xlu0 %v2408_v9  ;;  %v1547_v15 = vpop.f32.mrb[6].mxu0  ;;  %v1570_v16 = vadd.f32 %v1569_v13, %v1568_v11  ;;  %v1571_v17 = vpop.f32.mrb[6].mxu1 }
 0x38d   : > { %v1548_v18 = vpop.f32.mrb[7].mxu0  ;;  %v1572_v19 = vpop.f32.mrb[7].mxu1 }
 0x38e   : > { %v1549_v20 = vadd.f32 %v1548_v18, %v1547_v15  ;;  %v2413_v21 = vadd.f32 %v1546_v14, %v2398_v63  ;;  %v1573_v23 = vadd.f32 %v1572_v19, %v1571_v17  ;;  %v2424_v25 = vadd.f32 %v1570_v16, %v2398_v63 }
 0x390   : > { %1066 = vmax.xlane.f32.xlu1 %v2413_v21  ;;  %1064 = vmax.xlane.f32.xlu0 %v2416_v22  ;;  %v2421_v24 = vadd.f32 %v1549_v20, %v2398_v63  ;;  %v2429_v33 = vadd.f32 %v1573_v23, %v2398_v63 }
 0x392   : > { %v1550_v26 = vpop.f32.mrb[8].mxu0  ;;  %v1574_v27 = vpop.f32.mrb[8].mxu1 }
 0x393   : > { %v1551_v28 = vpop.f32.mrb[9].mxu0  ;;  %v1575_v29 = vpop.f32.mrb[9].mxu1 }
 0x394   : > { %v1552_v30 = vadd.f32 %v1551_v28, %v1550_v26  ;;  %1068 = vmax.xlane.f32.xlu1 %v2421_v24  ;;  %1082 = vmax.xlane.f32.xlu0 %v2424_v25  ;;  %v1553_v31 = vpop.f32.mrb[10].mxu0  ;;  %v1576_v32 = vadd.f32 %v1575_v29, %v1574_v27  ;;  %v1577_v34 = vpop.f32.mrb[10].mxu1 }
 0x395   : > { %v1554_v35 = vpop.f32.mrb[11].mxu0  ;;  %v1578_v36 = vpop.f32.mrb[11].mxu1 }
 0x396   : > { %v1555_v37 = vadd.f32 %v1554_v35, %v1553_v31  ;;  %v1016_v38 = vadd.f32 %v1552_v30, %v2398_v63  ;;  %v1579_v39 = vadd.f32 %v1578_v36, %v1577_v34  ;;  %v2437_v41 = vadd.f32 %v1576_v32, %v2398_v63 }
 0x398   : > { %1084 = vmax.xlane.f32.xlu1 %v2429_v33  ;;  %1070 = vmax.xlane.f32.xlu0 %v1016_v38  ;;  %v2434_v40 = vadd.f32 %v1555_v37, %v2398_v63  ;;  %v2442_v50 = vadd.f32 %v1579_v39, %v2398_v63 }
 0x39a   : > { %v1556_v43 = vpop.f32.mrb[12].mxu0  ;;  %v1580_v44 = vpop.f32.mrb[12].mxu1 }
 0x39b   : > { %v1557_v45 = vpop.f32.mrb[13].mxu0  ;;  %v1581_v46 = vpop.f32.mrb[13].mxu1 }
 0x39c   : > { %v1558_v47 = vadd.f32 %v1557_v45, %v1556_v43  ;;  %1072 = vmax.xlane.f32.xlu1 %v2434_v40  ;;  %1086 = vmax.xlane.f32.xlu0 %v2437_v41  ;;  %v1559_v48 = vpop.f32.mrb[14].mxu0  ;;  %v1582_v49 = vadd.f32 %v1581_v46, %v1580_v44  ;;  %v1583_v51 = vpop.f32.mrb[14].mxu1 }
 0x39d   : > { %v1560_v52 = vpop.f32.mrb[15].mxu0  ;;  %v1584_v53 = vpop.f32.mrb[15].mxu1 }
 0x39e   : > { %v1561_v54 = vadd.f32 %v1560_v52, %v1559_v48  ;;  %v2445_v55 = vadd.f32 %v1558_v47, %v2398_v63  ;;  %v1585_v56 = vadd.f32 %v1584_v53, %v1583_v51  ;;  %v2453_v58 = vadd.f32 %v1582_v49, %v2398_v63 }
 0x3a0   : > { %1088 = vmax.xlane.f32.xlu1 %v2442_v50  ;;  %1074 = vmax.xlane.f32.xlu0 %v2445_v55  ;;  %v2450_v57 = vadd.f32 %v1561_v54, %v2398_v63  ;;  %v2458_v59 = vadd.f32 %v1585_v56, %v2398_v63 }
 0x3a4   : > { %1076 = vmax.xlane.f32.xlu1 %v2450_v57  ;;  %1090 = vmax.xlane.f32.xlu0 %v2453_v58 }
 0x3a8   : > { %1092 = vmax.xlane.f32.xlu1 %v2458_v59 }
 0x415   : > { %v1063_v60 = vpop.xlane.xlu0 %1062 }
 0x416   : > { %v2462_v61 = vsub.f32 %v2401_v7, %v1063_v60 }
 0x417   : > { %v1081_v0 = vpop.xlane.xlu1 %1080 }
 0x418   : > { %v1110_v62 = vmul.f32 1.442695, %v2462_v61  ;;  %v2470_v63 = vsub.f32 %v2405_v8, %v1081_v0 }
 0x419   : > { %v1079_v1 = vpop.xlane.xlu0 %1078 }
 0x41a   : > { %1812 = vpow2.f32 %v1110_v62  ;;  %v2466_v2 = vsub.f32 %v2408_v9, %v1079_v1  ;;  %v1128_v12 = vmul.f32 1.442695, %v2470_v63 }
 0x41c   : > { %v1126_v42 = vmul.f32 1.442695, %v2466_v2 }
 0x41d   : > { %v1067_v3 = vpop.xlane.xlu1 %1066  ;;  %v1065_v4 = vpop.xlane.xlu0 %1064 }
 0x41e   : > { %1814 = vpow2.f32 %v1126_v42  ;;  %v2473_v5 = vsub.f32 %v2413_v21, %v1067_v3  ;;  %v2476_v6 = vsub.f32 %v2416_v22, %v1065_v4 }
 0x420   : > { %v1114_v7 = vmul.f32 1.442695, %v2473_v5  ;;  %v1112_v10 = vmul.f32 1.442695, %v2476_v6 }
 0x421   : > { %v1069_v9 = vpop.xlane.xlu1 %1068  ;;  %v1083_v11 = vpop.xlane.xlu0 %1082 }
 0x422   : > { %1816 = vpow2.f32 %v1114_v7  ;;  %v2482_v13 = vsub.f32 %v2421_v24, %v1069_v9  ;;  %v2485_v8 = vsub.f32 %v2424_v25, %v1083_v11 }
 0x423   : > { %1818 = vpow2.f32 %v1112_v10 }
 0x424   : > { %v1813_v14 = vpop.eup %1812  ;;  %v1130_v15 = vmul.f32 1.442695, %v2485_v8  ;;  %1820 = vpow2.f32 %v1128_v12  ;;  %v1116_v18 = vmul.f32 1.442695, %v2482_v13 }
 0x425   : > { %v1085_v16 = vpop.xlane.xlu1 %1084  ;;  %1142 = vadd.xlane.f32.xlu0 %v1813_v14  ;;  %v1071_v17 = vpop.xlane.xlu0 %1070 }
 0x426   : > { %v2490_v19 = vsub.f32 %v2429_v33, %v1085_v16  ;;  %v2492_v20 = vsub.f32 %v1016_v38, %v1071_v17  ;;  %1822 = vpow2.f32 %v1130_v15 }
 0x427   : > { %1824 = vpow2.f32 %v1116_v18 }
 0x428   : > { %v1815_v21 = vpop.eup %1814  ;;  %v1118_v22 = vmul.f32 1.442695, %v2492_v20  ;;  %v1132_v25 = vmul.f32 1.442695, %v2490_v19 }
 0x429   : > { %v1073_v23 = vpop.xlane.xlu1 %1072  ;;  %1158 = vadd.xlane.f32.xlu0 %v1815_v21  ;;  %v1087_v24 = vpop.xlane.xlu0 %1086 }
 0x42a   : > { %v2497_v26 = vsub.f32 %v2434_v40, %v1073_v23  ;;  %v2500_v27 = vsub.f32 %v2437_v41, %v1087_v24  ;;  %1826 = vpow2.f32 %v1118_v22 }
 0x42b   : > { %1828 = vpow2.f32 %v1132_v25 }
 0x42c   : > { %v1817_v28 = vpop.eup %1816  ;;  %v1134_v29 = vmul.f32 1.442695, %v2500_v27  ;;  %v1120_v33 = vmul.f32 1.442695, %v2497_v26 }
 0x42d   : > { %v1819_v30 = vpop.eup %1818  ;;  %v1089_v31 = vpop.xlane.xlu1 %1088  ;;  %1146 = vadd.xlane.f32.xlu0 %v1817_v28 }
 0x42e   : > { %v1075_v32 = vpop.xlane.xlu0 %1074  ;;  %v2505_v34 = vsub.f32 %v2442_v50, %v1089_v31  ;;  %1144 = vadd.xlane.f32.xlu1 %v1819_v30  ;;  %1830 = vpow2.f32 %v1134_v29  ;;  %v1821_v36 = vpop.eup %1820 }
 0x42f   : > { %v2508_v35 = vsub.f32 %v2445_v55, %v1075_v32  ;;  %1832 = vpow2.f32 %v1120_v33 }
 0x430   : > { %v1823_v38 = vpop.eup %1822  ;;  %v1136_v41 = vmul.f32 1.442695, %v2505_v34 }
 0x431   : > { %v1122_v37 = vmul.f32 1.442695, %v2508_v35  ;;  %v1077_v39 = vpop.xlane.xlu1 %1076  ;;  %1162 = vadd.xlane.f32.xlu0 %v1823_v38  ;;  %v1825_v45 = vpop.eup %1824 }
 0x432   : > { %v1091_v40 = vpop.xlane.xlu0 %1090  ;;  %1160 = vadd.xlane.f32.xlu1 %v1821_v36  ;;  %v2516_v44 = vsub.f32 %v2450_v57, %v1077_v39 }
 0x433   : > { %v2513_v43 = vsub.f32 %v2453_v58, %v1091_v40  ;;  %1834 = vpow2.f32 %v1122_v37 }
 0x434   : > { %v1827_v47 = vpop.eup %1826  ;;  %1836 = vpow2.f32 %v1136_v41  ;;  %v1124_v49 = vmul.f32 1.442695, %v2516_v44 }
 0x435   : > { %v1138_v46 = vmul.f32 1.442695, %v2513_v43  ;;  %v1093_v48 = vpop.xlane.xlu1 %1092  ;;  %1150 = vadd.xlane.f32.xlu0 %v1827_v47  ;;  %v1829_v51 = vpop.eup %1828 }
 0x436   : > { %1148 = vadd.xlane.f32.xlu1 %v1825_v45  ;;  %v2521_v50 = vsub.f32 %v2458_v59, %v1093_v48 }
 0x437   : > { %1838 = vpow2.f32 %v1138_v46 }
 0x438   : > { %v1831_v52 = vpop.eup %1830  ;;  %1840 = vpow2.f32 %v1124_v49  ;;  %v1140_v53 = vmul.f32 1.442695, %v2521_v50 }
 0x439   : > { %1166 = vadd.xlane.f32.xlu0 %v1831_v52  ;;  %v1833_v54 = vpop.eup %1832 }
 0x43a   : > { %1164 = vadd.xlane.f32.xlu1 %v1829_v51  ;;  %1842 = vpow2.f32 %v1140_v53 }
 0x43d   : > { %v1835_v55 = vpop.eup %1834 }
 0x43e   : > { %1152 = vadd.xlane.f32.xlu1 %v1833_v54  ;;  %1154 = vadd.xlane.f32.xlu0 %v1835_v55  ;;  %v1837_v56 = vpop.eup %1836 }
 0x441   : > { %v1839_v57 = vpop.eup %1838 }
 0x442   : > { %1168 = vadd.xlane.f32.xlu1 %v1837_v56  ;;  %1170 = vadd.xlane.f32.xlu0 %v1839_v57  ;;  %v1841_v58 = vpop.eup %1840 }
 0x444   : > { %v1843_v59 = vpop.eup %1842 }
 0x446   : > { %1156 = vadd.xlane.f32.xlu1 %v1841_v58 }
 0x44a   : > { %1172 = vadd.xlane.f32.xlu1 %v1843_v59 }
 0x4b2   : > { %v1143_v60 = vpop.xlane.xlu0 %1142 }
 0x4b3   : > { %1844 = vlog2.f32 %v1143_v60 }
 0x4b6   : > { %v1159_v62 = vpop.xlane.xlu0 %1158 }
 0x4b7   : > { %1846 = vlog2.f32 %v1159_v62 }
 0x4ba   : > { %v1147_v0 = vpop.xlane.xlu0 %1146 }
 0x4bb   : > { %v1145_v1 = vpop.xlane.xlu1 %1144  ;;  %1848 = vlog2.f32 %v1147_v0 }
 0x4bc   : > { %1850 = vlog2.f32 %v1145_v1 }
 0x4bd   : > { %v1845_v42 = vpop.eup %1844 }
 0x4be   : > { %v1175_v3 = vmul.f32 0.6931472, %v1845_v42  ;;  %v1163_v7 = vpop.xlane.xlu0 %1162 }
 0x4bf   : > { %v1161_v4 = vpop.xlane.xlu1 %1160 }
 0x4c0   : > { %v1206_v10 = vsub.f32 %v2462_v61, %v1175_v3  ;;  %1852 = vlog2.f32 %v1161_v4 }
 0x4c1   : > { %v1847_v9 = vpop.eup %1846  ;;  %1854 = vlog2.f32 %v1163_v7 }
 0x4c2   : > { %1222 = vst [vmem:[%s2320_s18] sm:$0xff] %v1206_v10  ;;  %v1191_v11 = vmul.f32 0.6931472, %v1847_v9  ;;  %v1151_v14 = vpop.xlane.xlu0 %1150 }
 0x4c3   : > { %v1149_v12 = vpop.xlane.xlu1 %1148 }
 0x4c4   : > { %v1214_v15 = vsub.f32 %v2466_v2, %v1191_v11  ;;  %1856 = vlog2.f32 %v1149_v12 }
 0x4c5   : > { %v1849_v16 = vpop.eup %1848  ;;  %1858 = vlog2.f32 %v1151_v14 }
 0x4c6   : > { %v1851_v17 = vpop.eup %1850  ;;  %1230 = vst [vmem:[%s2320_s18 + $0x40] sm:$0xff] %v1214_v15  ;;  %v1179_v18 = vmul.f32 0.6931472, %v1849_v16  ;;  %v1167_v61 = vpop.xlane.xlu0 %1166 }
 0x4c7   : > { %v1177_v21 = vmul.f32 0.6931472, %v1851_v17  ;;  %v1165_v22 = vpop.xlane.xlu1 %1164 }
 0x4c8   : > { %v1208_v23 = vsub.f32 %v2473_v5, %v1179_v18  ;;  %1860 = vlog2.f32 %v1165_v22 }
 0x4c9   : > { %v1207_v24 = vsub.f32 %v2476_v6, %v1177_v21  ;;  %1862 = vlog2.f32 %v1167_v61 }
 0x4ca   : > { %v1853_v25 = vpop.eup %1852  ;;  %1224 = vst [vmem:[%s2320_s18 + $0x10] sm:$0xff] %v1208_v23 }
 0x4cb   : > { %v1855_v2 = vpop.eup %1854  ;;  %1223 = vst [vmem:[%s2320_s18 + $0x8] sm:$0xff] %v1207_v24  ;;  %v1193_v28 = vmul.f32 0.6931472, %v1853_v25  ;;  %v1153_v29 = vpop.xlane.xlu1 %1152 }
 0x4cc   : > { %v1155_v30 = vpop.xlane.xlu0 %1154  ;;  %v1195_v31 = vmul.f32 0.6931472, %v1855_v2  ;;  %1864 = vlog2.f32 %v1153_v29 }
 0x4cd   : > { %v1215_v32 = vsub.f32 %v2470_v63, %v1193_v28  ;;  %1866 = vlog2.f32 %v1155_v30 }
 0x4ce   : > { %v1857_v5 = vpop.eup %1856  ;;  %v1216_v33 = vsub.f32 %v2485_v8, %v1195_v31 }
 0x4cf   : > { %v1859_v6 = vpop.eup %1858  ;;  %1231 = vst [vmem:[%s2320_s18 + $0x48] sm:$0xff] %v1215_v32  ;;  %v1181_v36 = vmul.f32 0.6931472, %v1857_v5  ;;  %v1169_v37 = vpop.xlane.xlu1 %1168 }
 0x4d0   : > { %v1171_v38 = vpop.xlane.xlu0 %1170  ;;  %1232 = vst [vmem:[%s2320_s18 + $0x50] sm:$0xff] %v1216_v33  ;;  %v1183_v39 = vmul.f32 0.6931472, %v1859_v6  ;;  %1868 = vlog2.f32 %v1169_v37 }
 0x4d1   : > { %v1209_v40 = vsub.f32 %v2482_v13, %v1181_v36  ;;  %1870 = vlog2.f32 %v1171_v38 }
 0x4d2   : > { %v1861_v41 = vpop.eup %1860  ;;  %v1210_v63 = vsub.f32 %v2492_v20, %v1183_v39 }
 0x4d3   : > { %v1863_v45 = vpop.eup %1862  ;;  %1225 = vst [vmem:[%s2320_s18 + $0x18] sm:$0xff] %v1209_v40  ;;  %v1197_v8 = vmul.f32 0.6931472, %v1861_v41  ;;  %v1157_v46 = vpop.xlane.xlu1 %1156 }
 0x4d4   : > { %1226 = vst [vmem:[%s2320_s18 + $0x20] sm:$0xff] %v1210_v63  ;;  %v1199_v47 = vmul.f32 0.6931472, %v1863_v45  ;;  %1872 = vlog2.f32 %v1157_v46 }
 0x4d5   : > { %v1217_v48 = vsub.f32 %v2490_v19, %v1197_v8 }
 0x4d6   : > { %v1865_v49 = vpop.eup %1864  ;;  %v1218_v51 = vsub.f32 %v2500_v27, %v1199_v47 }
 0x4d7   : > { %v1867_v13 = vpop.eup %1866  ;;  %1233 = vst [vmem:[%s2320_s18 + $0x58] sm:$0xff] %v1217_v48  ;;  %v1185_v52 = vmul.f32 0.6931472, %v1865_v49  ;;  %v1173_v53 = vpop.xlane.xlu1 %1172 }
 0x4d8   : > { %1234 = vst [vmem:[%s2320_s18 + $0x60] sm:$0xff] %v1218_v51  ;;  %v1187_v20 = vmul.f32 0.6931472, %v1867_v13  ;;  %1874 = vlog2.f32 %v1173_v53 }
 0x4d9   : > { %v1211_v54 = vsub.f32 %v2497_v26, %v1185_v52 }
 0x4da   : > { %v1869_v55 = vpop.eup %1868  ;;  %v1212_v56 = vsub.f32 %v2508_v35, %v1187_v20 }
 0x4db   : > { %v1871_v19 = vpop.eup %1870  ;;  %1227 = vst [vmem:[%s2320_s18 + $0x28] sm:$0xff] %v1211_v54  ;;  %v1201_v57 = vmul.f32 0.6931472, %v1869_v55 }
 0x4dc   : > { %1228 = vst [vmem:[%s2320_s18 + $0x30] sm:$0xff] %v1212_v56  ;;  %v1203_v27 = vmul.f32 0.6931472, %v1871_v19 }
 0x4dd   : > { %v1219_v58 = vsub.f32 %v2505_v34, %v1201_v57 }
 0x4de   : > { %v1873_v59 = vpop.eup %1872  ;;  %v1220_v60 = vsub.f32 %v2513_v43, %v1203_v27 }
 0x4df   : > { %1235 = vst [vmem:[%s2320_s18 + $0x68] sm:$0xff] %v1219_v58  ;;  %v1189_v62 = vmul.f32 0.6931472, %v1873_v59 }
 0x4e0   : > { %1236 = vst [vmem:[%s2320_s18 + $0x70] sm:$0xff] %v1220_v60 }
 0x4e1   : > { %v1213_v26 = vsub.f32 %v2516_v44, %v1189_v62 }
 0x4e2   : > { %v1875_v0 = vpop.eup %1874 }
 0x4e3   : > { %1229 = vst [vmem:[%s2320_s18 + $0x38] sm:$0xff] %v1213_v26  ;;  %v1205_v1 = vmul.f32 0.6931472, %v1875_v0 }
 0x4e5   : > { %v1221_v35 = vsub.f32 %v2521_v50, %v1205_v1 }
 0x4e7   : > { %1237 = vst [vmem:[%s2320_s18 + $0x78] sm:$0xff] %v1221_v35 }
 0x4e8 PF: > { %s1441_s8 = sshll.u32 %s2048_s21, 11  ;;  %s1252_s17 = sshll.u32 %s2320_s18, 4  ;;  %s2563_s17 = int_to_ptr.vmem [resolvable:$true] %s1252_s17 }
 0x4e9   : > { %s2560_s26 = scalar_lea.hbm %s2622_s5, %s1441_s8  ;;  %s1239_s7 = scalar_lea.sflag [#allocation5], %s2305_s29 }
 0x4ea   : > { %s1962_s28 = scalar_lea.vmem %s2563_s17, 2048  ;;  %s2074_s30 = smov [#allocation9]  }
 0x4eb   : > { %p1963_p4 = scmp.ne.s32.totalorder %s2563_s17, %s1962_s28  ;;  %s1966_s6 = sshll.u32 %s2074_s30, 4  ;;  %s1967_s6 = int_to_ptr.vmem [resolvable:$false] %s1966_s6 }
 0x4ec   : > { %s1968_s21 = scalar_lea.vmem %s1967_s6, 4096  ;;  %p1969_p3 = scmp.lt.s32.totalorder %s2563_s17, %s1967_s6 }
 0x4ed   : > { %p1964_p6 = pnand %p1963_p4, %p2249_p8  ;;  %p1970_p7 = scmp.lt.s32.totalorder %s1968_s21, %s1962_s28 }
 0x4ef   : > { %p1965_p13 = pneg %p1964_p6  ;;  %p1971_p12 = por %p1970_p7, %p1969_p3 }
 0x4f1   : > { %p1972_p11 = pnand %p1971_p12, %p1965_p13 }
 0x4f3   : > { %1975 = shalt.err (!%p1972_p11)
}
 0x4f4   : > { %s1976_s18 = scalar_lea.hbm %s2560_s26, 2048  ;;  %s1980_s22 = scalar_lea.hbm %s2622_s5, 4096 }
 0x4f5   : > { %p1977_p1 = scmp.ne.s32.totalorder %s2560_s26, %s1976_s18  ;;  %p1981_p0 = scmp.lt.u32.totalorder %s2560_s26, %s2622_s5 }
 0x4f6   : > { %p1982_p2 = scmp.lt.u32.totalorder %s1980_s22, %s1976_s18  ;;  %p1984_p4 = scmp.lt.u32.totalorder %s1976_s18, %s2560_s26 }
 0x4f7   : > { %p1978_p5 = pnand %p1977_p1, %p2249_p8 }
 0x4f8   : > { %p1983_p10 = por %p1982_p2, %p1981_p0 }
 0x4f9   : > { %p1979_p9 = pneg %p1978_p5 }
 0x4fa   : > { %p1985_p6 = por %p1984_p4, %p1983_p10 }
 0x4fc   : > { %p1986_p13 = pnand %p1985_p6, %p1979_p9 }
 0x4fe   : > { %1989 = shalt.err (!%p1986_p13)
}
 0x4ff   : > { %s2075_s27 = smov 128   ;;  %s2076_s13 = smov 8  }
 0x500   : > { %1644 = dma.vmem_to_hbm [thread:$0]  (%p2249_p8), %s2563_s17, 2048, %s2560_s26, %s1239_s7, %s2075_s27, %s2075_s27, %s2076_s13  }
 0x501 PF: > { %s2644_s28 = sld [smem:[#allocation13_spill]]  ;;  %s2645_s30 = sld [smem:[#allocation14_spill]] }
 0x502   : > { %p1666_p3 = scmp.ge.s32.totalorder %s2064_s25, 2 }
 0x507   : > { %s1267_s6 = sand.u32 1, %s2644_s28   ;;  %p2646_p7 = scmp.ne.s32.totalorder %s2645_s30, 0 }
 0x508   : > { %s1268_s21 = scalar_lea.sflag [#allocation5], %s1267_s6 }
 0x509   : > { %p1658_p12 = pnand %p1666_p3, %p2646_p7 }
 0x50b   : > { %2031 = dma.done.wait (!%p1658_p12), %s1268_s21, 2048  }
 0x50c   : > { %2033 = vsyncadd (!%p1658_p12), %s1268_s21, 4294965248  ;;  %s22_s25 = sadd.s32 1, %s2064_s25   ;;  %s2647_s18 = smov %s2040_s19 }
 0x50d   : > { %p19_p11 = scmp.ge.s32.totalorder %s22_s25, 6   ;;  %s2648_s19 = smov %s2044_s20 }
 0x50e   : > { %s2649_s20 = smov %s2257_s11  ;;  %s2650_s21 = smov %s2056_s23 }
 0x50f   : > { %s2651_s22 = smov %s2060_s24  ;;  %s2652_s23 = smov %s2655_s14 }
 0x510   : > { %s2653_s24 = smov %s2659_s15  ;;  %21 = sbr.rel (!%p19_p11) target bundleno = 8 (0x8), region = 102 }
 0x517   :  { %1273 = vsyncpa [#allocation4], 1 }
 0x518   :  { %1275 = vsyncpa [#allocation4 + $0x1], 1 }
 0x519   :  { %1276 = vsyncpa [#allocation7], 1 }
 0x51a   :  { %1277 = vsyncpa [#allocation5], 1 }
 0x51b   :  { %1279 = vsyncpa [#allocation5 + $0x1], 1 }

</bundles_post_ra>
